<compile_context>
chip_gen: v5e
topology: v5e:2x2
jax: 0.10.0
libtpu: 0.0.40
codegen_flags: <defaults>
</compile_context>

<pallas_src>
import jax
import jax.numpy as jnp
from jax.experimental import pallas as pl
from jax.experimental.pallas import tpu as pltpu

FEATURE_DIM = 512          # resnet18 -> feature_dim = 512
HID1, HID2, HID3 = 256, 128, 64
BN_EPS = 1e-5
INITIAL_VALUE = 15.0       # nn.init.constant_(final_layer.bias, initial_value)

# Packed bias/final-layer row layout (f32).  w4 starts at a 128-lane-aligned
# offset; total width padded to 5 * 128 lanes.
_B1_OFF = 0
_B2_OFF = HID1                      # 256
_B3_OFF = HID1 + HID2               # 384
_W4_OFF = 512
_B4_OFF = _W4_OFF + HID3            # 576
_PACK_WIDTH = 640


# --------------------------------------------------------------------------- #
# Kernel
# --------------------------------------------------------------------------- #
def _head_kernel(x_ref, w1_ref, w2_ref, w3_ref, bias_ref, out_ref):
    """Global-avg-pool + (BN-folded) 3-layer MLP + final dot, all in VMEM.

    x_ref    : (TB, HW, C)  backbone feature tile, channels-last, native dtype
    wK_ref   : (in, out)    bf16 Linear weights; eval-BN scale folded in and
                            w1 additionally carries the 1/HW pooling scale
    bias_ref : (1, 640)     f32 packed [b1 | b2 | b3 | pad | w4 | b4 | pad]
    out_ref  : (TB, 1)      f32 regression output tile
    """
    # AdaptiveAvgPool2d(1) + Flatten: spatial SUM with f32 accumulation (no
    # explicit full-tile f32 copy); the 1/HW scale lives in w1.
    pooled_sum = jnp.sum(x_ref[...], axis=1, dtype=jnp.float32)         # (TB, C)

    b1 = bias_ref[:, _B1_OFF:_B1_OFF + HID1]
    b2 = bias_ref[:, _B2_OFF:_B2_OFF + HID2]
    b3 = bias_ref[:, _B3_OFF:_B3_OFF + HID3]
    w4 = bias_ref[:, _W4_OFF:_W4_OFF + HID3]
    b4 = bias_ref[:, _B4_OFF:_B4_OFF + 1]

    # Linear -> BatchNorm1d(eval, folded) -> ReLU   (Dropout = identity in eval)
    h = jnp.dot(pooled_sum.astype(w1_ref.dtype), w1_ref[...],
                preferred_element_type=jnp.float32) + b1
    h = jnp.maximum(h, 0.0)                                              # (TB, 256)

    h = jnp.dot(h.astype(w2_ref.dtype), w2_ref[...],
                preferred_element_type=jnp.float32) + b2
    h = jnp.maximum(h, 0.0)                                              # (TB, 128)

    h = jnp.dot(h.astype(w3_ref.dtype), w3_ref[...],
                preferred_element_type=jnp.float32) + b3
    h = jnp.maximum(h, 0.0)                                              # (TB, 64)

    # Final Linear(64, 1): VPU multiply + cross-lane sum (no N=1 MXU matmul).
    out_ref[...] = jnp.sum(h * w4, axis=-1, keepdims=True) + b4          # (TB, 1)


# --------------------------------------------------------------------------- #
# Parameter preparation (BN + pooling-scale folding, bf16 weight packing)
# --------------------------------------------------------------------------- #
def _fold_bn(gamma, beta, running_mean, running_var, eps=BN_EPS):
    scale = gamma / jnp.sqrt(running_var + eps)
    shift = beta - running_mean * scale
    return scale, shift


def fold_and_pack_params(raw, pool_size, compute_dtype=jnp.bfloat16):
    """Fold eval-mode BN (and the 1/HW pooling scale into w1), cast to bf16,
    and pack all small biases + the final layer into one lane-dense f32 row."""
    def fold(w, b, bn, extra_scale=1.0):
        s, t = _fold_bn(*bn)
        w_f = (w * s[None, :] * extra_scale).astype(compute_dtype)       # scale cols
        b_f = (b * s + t).astype(jnp.float32)
        return w_f, b_f

    w1, b1 = fold(raw["w1"], raw["b1"], raw["bn1"], extra_scale=1.0 / pool_size)
    w2, b2 = fold(raw["w2"], raw["b2"], raw["bn2"])
    w3, b3 = fold(raw["w3"], raw["b3"], raw["bn3"])

    row = jnp.zeros((_PACK_WIDTH,), jnp.float32)
    row = row.at[_B1_OFF:_B1_OFF + HID1].set(b1)
    row = row.at[_B2_OFF:_B2_OFF + HID2].set(b2)
    row = row.at[_B3_OFF:_B3_OFF + HID3].set(b3)
    row = row.at[_W4_OFF:_W4_OFF + HID3].set(raw["w4"].reshape(-1).astype(jnp.float32))
    row = row.at[_B4_OFF].set(raw["b4"].reshape(()).astype(jnp.float32))
    return {"w1": w1, "w2": w2, "w3": w3, "bias_row": row.reshape(1, _PACK_WIDTH)}


# --------------------------------------------------------------------------- #
# Batch-tile selection (generation-aware via a conservative VMEM estimate)
# --------------------------------------------------------------------------- #
def _round_up(x, m):
    return ((x + m - 1) // m) * m


def _choose_batch_tile(B, HW, C, x_itemsize, batch_tile):
    # Default large tile: the kernel is HBM-bandwidth-bound, so big contiguous
    # DMAs (amortizing the ~0.35us/step cost) are the main lever, esp. on v7x.
    if batch_tile is None:
        batch_tile = 512
    TB = min(batch_tile, B)

    # Keep >= 2 grid steps when possible so the "parallel" batch axis can shard
    # across v7x's two TensorCores (harmless on single-TC v5e/v6e).
    if B > 8:
        TB = min(TB, max(8, _round_up(pl.cdiv(B, 2), 8)))

    if TB < B:
        TB = max(8, (TB // 8) * 8)          # keep (8,128) output tiling happy

    # Conservative VMEM estimate: double-buffered bf16 input tile, a worst-case
    # f32 temp for the pooling reduce, f32 activations, resident bf16 weights.
    weight_bytes = (FEATURE_DIM * HID1 + HID1 * HID2 + HID2 * HID3) * 2 * 2 \
                   + _PACK_WIDTH * 4 * 2

    def vmem_est(tb):
        return (2 * tb * HW * C * x_itemsize
                + tb * HW * C * 4
                + tb * (C + HID1 + HID2 + HID3 + 1) * 4
                + weight_bytes)

    vmem_soft_cap = 48 << 20                # stay well under v7x 64 MiB physical
    while TB > 8 and vmem_est(TB) > vmem_soft_cap:
        TB = max(8, ((TB // 2) // 8) * 8)

    # Prefer a TB that divides B (no padded last tile), unless that would
    # shrink the tile by more than ~2x.
    if TB < B and B % TB != 0:
        for cand in range(TB, max(8, TB // 2) - 1, -8):
            if B % cand == 0:
                TB = cand
                break

    vmem_limit = int(min(56 << 20, max(vmem_est(TB) + (4 << 20), 32 << 20)))
    return TB, vmem_limit


# --------------------------------------------------------------------------- #
# Wrapper
# --------------------------------------------------------------------------- #
def frozen_cnn_regressor_head(feat_nhwc, packed, *, batch_tile=None):
    """feat_nhwc: (B, H, W, C) backbone feature map, channels-last, any float dtype.
    Returns: (B,) regression output (matches torch `.squeeze()`)."""
    B, H, W, C = feat_nhwc.shape
    assert C == FEATURE_DIM
    HW = H * W
    x = feat_nhwc.reshape(B, HW, C)        # free reshape, no transpose / HBM copy

    TB, vmem_limit = _choose_batch_tile(
        B, HW, C, jnp.dtype(feat_nhwc.dtype).itemsize, batch_tile)
    grid = (pl.cdiv(B, TB),)

    def resident(arr):                      # weights/biases: same block every step
        return pl.BlockSpec(arr.shape, lambda i: (0,) * arr.ndim)

    in_specs = [
        pl.BlockSpec((TB, HW, C), lambda i: (i, 0, 0)),
        resident(packed["w1"]), resident(packed["w2"]), resident(packed["w3"]),
        resident(packed["bias_row"]),
    ]
    out_specs = pl.BlockSpec((TB, 1), lambda i: (i, 0))

    out = pl.pallas_call(
        _head_kernel,
        out_shape=jax.ShapeDtypeStruct((B, 1), jnp.float32),
        grid=grid,
        in_specs=in_specs,
        out_specs=out_specs,
        compiler_params=pltpu.CompilerParams(
            dimension_semantics=("parallel",),
            vmem_limit_bytes=vmem_limit),
    )(x, packed["w1"], packed["w2"], packed["w3"], packed["bias_row"])
    return jnp.squeeze(out)                 # torch: self.regressor(pooled).squeeze()


# --------------------------------------------------------------------------- #
# Torch-style parameter construction (for the demo)
# --------------------------------------------------------------------------- #
def _torch_linear_init(key, fan_in, fan_out):
    """PyTorch nn.Linear default init: U(-1/sqrt(fan_in), 1/sqrt(fan_in))."""
    kw, kb = jax.random.split(key)
    bound = 1.0 / jnp.sqrt(jnp.float32(fan_in))
    w = jax.random.uniform(kw, (fan_in, fan_out), jnp.float32, -bound, bound)
    b = jax.random.uniform(kb, (fan_out,), jnp.float32, -bound, bound)
    return w, b


def make_params(key):
    keys = jax.random.split(key, 16)
    w1, b1 = _torch_linear_init(keys[0], FEATURE_DIM, HID1)
    w2, b2 = _torch_linear_init(keys[1], HID1, HID2)
    w3, b3 = _torch_linear_init(keys[2], HID2, HID3)
    w4, _ = _torch_linear_init(keys[3], HID3, 1)
    b4 = jnp.full((1,), INITIAL_VALUE, jnp.float32)   # constant_(bias, 15.0)

    def bn(kg, kb, km, kv, n):
        gamma = jax.random.uniform(kg, (n,), jnp.float32, 0.5, 1.5)
        beta = 0.1 * jax.random.normal(kb, (n,), jnp.float32)
        mean = 0.1 * jax.random.normal(km, (n,), jnp.float32)
        var = jax.random.uniform(kv, (n,), jnp.float32, 0.5, 1.5)
        return gamma, beta, mean, var

    return {
        "w1": w1, "b1": b1, "bn1": bn(keys[4], keys[5], keys[6], keys[7], HID1),
        "w2": w2, "b2": b2, "bn2": bn(keys[8], keys[9], keys[10], keys[11], HID2),
        "w3": w3, "b3": b3, "bn3": bn(keys[12], keys[13], keys[14], keys[15], HID3),
        "w4": w4, "b4": b4,
    }


# --------------------------------------------------------------------------- #
# References
# --------------------------------------------------------------------------- #
def _reference_packed(feat_nhwc, packed):
    """Pure-JAX replica of the packed (bf16-weight, BN+1/HW-folded) kernel math."""
    pooled_sum = jnp.sum(feat_nhwc.astype(jnp.float32), axis=(1, 2))     # (B, C)

    def layer(h, w, b):
        y = jnp.dot(h.astype(w.dtype), w, preferred_element_type=jnp.float32) + b
        return jnp.maximum(y, 0.0)

    bias = packed["bias_row"][0]
    h = layer(pooled_sum, packed["w1"], bias[_B1_OFF:_B1_OFF + HID1])
    h = layer(h, packed["w2"], bias[_B2_OFF:_B2_OFF + HID2])
    h = layer(h, packed["w3"], bias[_B3_OFF:_B3_OFF + HID3])
    w4 = bias[_W4_OFF:_W4_OFF + HID3]
    b4 = bias[_B4_OFF]
    return jnp.squeeze(jnp.sum(h * w4, axis=-1) + b4)


def _reference_raw(feat_nhwc, raw):
    """Full-f32 eval-mode replica of the torch head (un-folded BN) for a
    looser-tolerance sanity check of the bf16/folded path."""
    pooled = jnp.mean(feat_nhwc.astype(jnp.float32), axis=(1, 2))

    def block(h, w, b, bn):
        gamma, beta, mean, var = bn
        y = h @ w + b
        y = (y - mean) / jnp.sqrt(var + BN_EPS) * gamma + beta
        return jnp.maximum(y, 0.0)          # Dropout = identity in eval

    h = block(pooled, raw["w1"], raw["b1"], raw["bn1"])
    h = block(h, raw["w2"], raw["b2"], raw["bn2"])
    h = block(h, raw["w3"], raw["b3"], raw["bn3"])
    return jnp.squeeze(h @ raw["w4"] + raw["b4"])


if __name__ == "__main__":
    key = jax.random.PRNGKey(0)
    k_feat, k_params = jax.random.split(key)

    # Backbone output feature map, e.g. resnet18 features of a 128x128 image:
    # (batch=2, 4, 4, feature_dim=512), channels-last, bf16 (native backbone dtype).
    B, H, W, C = 2, 4, 4, FEATURE_DIM
    feat = jax.random.normal(k_feat, (B, H, W, C), jnp.float32).astype(jnp.bfloat16)

    raw_params = make_params(k_params)
    packed = fold_and_pack_params(raw_params, pool_size=H * W)

    out = frozen_cnn_regressor_head(feat, packed)
    out = jax.block_until_ready(out)
    assert out.shape == (B,), out.shape

    ref_packed = _reference_packed(feat, packed)
    ref_raw = _reference_raw(feat, raw_params)
    assert jnp.allclose(out, ref_packed, atol=5e-2, rtol=1e-3), (out, ref_packed)
    assert jnp.allclose(out, ref_raw, atol=2e-1, rtol=1e-2), (out, ref_raw)

    print("KERNEL_OK")
</pallas_src>

<mosaic_0001>
module attributes {stable_mosaic.version = 11 : i64} {
  func.func @_head_kernel(%arg0: i32, %arg1: memref<2x16x512xbf16, #tpu.memory_space<vmem>>, %arg2: memref<512x256xbf16, #tpu.memory_space<vmem>>, %arg3: memref<256x128xbf16, #tpu.memory_space<vmem>>, %arg4: memref<128x64xbf16, #tpu.memory_space<vmem>>, %arg5: memref<1x640xf32, #tpu.memory_space<vmem>>, %arg6: memref<2x1xf32, #tpu.memory_space<vmem>>) attributes {dimension_semantics = [#tpu.dimension_semantics<parallel>], iteration_bounds = array<i64: 1>, scalar_prefetch = 0 : i64, scratch_operands = 0 : i64, tpu.core_type = #tpu.core_type<tc>, window_params = [{transform_indices = @transform_0, window_bounds = array<i64: 2, 16, 512>}, {pipeline_mode = #tpu.pipeline_mode<synchronous>, transform_indices = @transform_1, window_bounds = array<i64: 512, 256>}, {pipeline_mode = #tpu.pipeline_mode<synchronous>, transform_indices = @transform_2, window_bounds = array<i64: 256, 128>}, {pipeline_mode = #tpu.pipeline_mode<synchronous>, transform_indices = @transform_3, window_bounds = array<i64: 128, 64>}, {pipeline_mode = #tpu.pipeline_mode<synchronous>, transform_indices = @transform_4, window_bounds = array<i64: 1, 640>}, {transform_indices = @transform_5, window_bounds = array<i64: 2, 1>}]} {
    %c0 = arith.constant 0 : index
    %c0_0 = arith.constant 0 : index
    %c0_1 = arith.constant 0 : index
    %0 = vector.load %arg1[%c0, %c0_0, %c0_1] : memref<2x16x512xbf16, #tpu.memory_space<vmem>>, vector<2x16x512xbf16>
    %1 = arith.extf %0 : vector<2x16x512xbf16> to vector<2x16x512xf32>
    %cst = arith.constant dense<0.000000e+00> : vector<2x512xf32>
    %2 = vector.multi_reduction <add>, %1, %cst [1] : vector<2x16x512xf32> to vector<2x512xf32>
    %c0_2 = arith.constant 0 : index
    %c0_3 = arith.constant 0 : index
    %3 = vector.load %arg5[%c0_2, %c0_3] : memref<1x640xf32, #tpu.memory_space<vmem>>, vector<1x256xf32>
    %c0_4 = arith.constant 0 : index
    %c256 = arith.constant 256 : index
    %4 = vector.load %arg5[%c0_4, %c256] : memref<1x640xf32, #tpu.memory_space<vmem>>, vector<1x128xf32>
    %c0_5 = arith.constant 0 : index
    %c384 = arith.constant 384 : index
    %5 = vector.load %arg5[%c0_5, %c384] : memref<1x640xf32, #tpu.memory_space<vmem>>, vector<1x64xf32>
    %c0_6 = arith.constant 0 : index
    %c512 = arith.constant 512 : index
    %6 = vector.load %arg5[%c0_6, %c512] : memref<1x640xf32, #tpu.memory_space<vmem>>, vector<1x64xf32>
    %c0_7 = arith.constant 0 : index
    %c576 = arith.constant 576 : index
    %7 = vector.load %arg5[%c0_7, %c576] : memref<1x640xf32, #tpu.memory_space<vmem>>, vector<1x1xf32>
    %8 = arith.truncf %2 : vector<2x512xf32> to vector<2x512xbf16>
    %c0_8 = arith.constant 0 : index
    %c0_9 = arith.constant 0 : index
    %9 = vector.load %arg2[%c0_8, %c0_9] : memref<512x256xbf16, #tpu.memory_space<vmem>>, vector<512x256xbf16>
    %cst_10 = arith.constant dense<0.000000e+00> : vector<2x256xf32>
    %10 = tpu.matmul %8, %9, %cst_10 {dimension_numbers = #tpu.dot_dimension_numbers<[1], [0], [0], [1], [0, 0, 1, 1], [], []>} : vector<2x512xbf16>, vector<512x256xbf16>, vector<2x256xf32> -> vector<2x256xf32>
    %11 = vector.broadcast %3 : vector<1x256xf32> to vector<2x256xf32>
    %12 = arith.addf %10, %11 : vector<2x256xf32>
    %cst_11 = arith.constant 0.000000e+00 : f32
    %13 = vector.broadcast %cst_11 : f32 to vector<2x256xf32>
    %14 = arith.maximumf %12, %13 : vector<2x256xf32>
    %15 = arith.truncf %14 : vector<2x256xf32> to vector<2x256xbf16>
    %c0_12 = arith.constant 0 : index
    %c0_13 = arith.constant 0 : index
    %16 = vector.load %arg3[%c0_12, %c0_13] : memref<256x128xbf16, #tpu.memory_space<vmem>>, vector<256x128xbf16>
    %cst_14 = arith.constant dense<0.000000e+00> : vector<2x128xf32>
    %17 = tpu.matmul %15, %16, %cst_14 {dimension_numbers = #tpu.dot_dimension_numbers<[1], [0], [0], [1], [0, 0, 1, 1], [], []>} : vector<2x256xbf16>, vector<256x128xbf16>, vector<2x128xf32> -> vector<2x128xf32>
    %18 = vector.broadcast %4 : vector<1x128xf32> to vector<2x128xf32>
    %19 = arith.addf %17, %18 : vector<2x128xf32>
    %cst_15 = arith.constant 0.000000e+00 : f32
    %20 = vector.broadcast %cst_15 : f32 to vector<2x128xf32>
    %21 = arith.maximumf %19, %20 : vector<2x128xf32>
    %22 = arith.truncf %21 : vector<2x128xf32> to vector<2x128xbf16>
    %c0_16 = arith.constant 0 : index
    %c0_17 = arith.constant 0 : index
    %23 = vector.load %arg4[%c0_16, %c0_17] : memref<128x64xbf16, #tpu.memory_space<vmem>>, vector<128x64xbf16>
    %cst_18 = arith.constant dense<0.000000e+00> : vector<2x64xf32>
    %24 = tpu.matmul %22, %23, %cst_18 {dimension_numbers = #tpu.dot_dimension_numbers<[1], [0], [0], [1], [0, 0, 1, 1], [], []>} : vector<2x128xbf16>, vector<128x64xbf16>, vector<2x64xf32> -> vector<2x64xf32>
    %25 = vector.broadcast %5 : vector<1x64xf32> to vector<2x64xf32>
    %26 = arith.addf %24, %25 : vector<2x64xf32>
    %cst_19 = arith.constant 0.000000e+00 : f32
    %27 = vector.broadcast %cst_19 : f32 to vector<2x64xf32>
    %28 = arith.maximumf %26, %27 : vector<2x64xf32>
    %29 = vector.broadcast %6 : vector<1x64xf32> to vector<2x64xf32>
    %30 = arith.mulf %28, %29 : vector<2x64xf32>
    %cst_20 = arith.constant dense<0.000000e+00> : vector<2xf32>
    %31 = vector.multi_reduction <add>, %30, %cst_20 [1] : vector<2x64xf32> to vector<2xf32>
    %32 = vector.shape_cast %31 : vector<2xf32> to vector<2x1xf32>
    %33 = vector.broadcast %7 : vector<1x1xf32> to vector<2x1xf32>
    %34 = arith.addf %32, %33 : vector<2x1xf32>
    %c0_21 = arith.constant 0 : index
    %c0_22 = arith.constant 0 : index
    %35 = vector.load %arg6[%c0_21, %c0_22] : memref<2x1xf32, #tpu.memory_space<vmem>>, vector<2x1xf32>
    tpu.vector_store %arg6[%c0_21, %c0_22], %34 {strides = array<i32>} : memref<2x1xf32, #tpu.memory_space<vmem>>, vector<2x1xf32>,
    return
  }
  func.func @transform_0(%arg0: i32) -> (i32, i32, i32) {
    %c0_i32 = arith.constant 0 : i32
    %c0_i32_0 = arith.constant 0 : i32
    %c0_i32_1 = arith.constant 0 : i32
    return %arg0, %c0_i32, %c0_i32_0 : i32, i32, i32
  }
  func.func @transform_1(%arg0: i32) -> (i32, i32) {
    %c0_i32 = arith.constant 0 : i32
    %c0_i32_0 = arith.constant 0 : i32
    %c0_i32_1 = arith.constant 0 : i32
    return %c0_i32, %c0_i32_0 : i32, i32
  }
  func.func @transform_2(%arg0: i32) -> (i32, i32) {
    %c0_i32 = arith.constant 0 : i32
    %c0_i32_0 = arith.constant 0 : i32
    %c0_i32_1 = arith.constant 0 : i32
    return %c0_i32, %c0_i32_0 : i32, i32
  }
  func.func @transform_3(%arg0: i32) -> (i32, i32) {
    %c0_i32 = arith.constant 0 : i32
    %c0_i32_0 = arith.constant 0 : i32
    %c0_i32_1 = arith.constant 0 : i32
    return %c0_i32, %c0_i32_0 : i32, i32
  }
  func.func @transform_4(%arg0: i32) -> (i32, i32) {
    %c0_i32 = arith.constant 0 : i32
    %c0_i32_0 = arith.constant 0 : i32
    %c0_i32_1 = arith.constant 0 : i32
    return %c0_i32, %c0_i32_0 : i32, i32
  }
  func.func @transform_5(%arg0: i32) -> (i32, i32) {
    %c0_i32 = arith.constant 0 : i32
    %c0_i32_0 = arith.constant 0 : i32
    return %arg0, %c0_i32 : i32, i32
  }
}

</mosaic_0001>

<bundles_post_ra>
// kernel: tpu_custom_call.1
= control target key start
LH: loop header
LB: loop body
LE: loop exit
PB: predicated region body
PF: predicated region fallthrough
CT: control target
= control target key end

     0   :  { %10 = vsyncpa [#allocation3], 0  ;;  %s1681_s0 = inlined_call_operand.vmem [shape: bf16[2,16,512], index: 0, kind: input, shape index: {}]   ;;  %s1682_s1 = inlined_call_operand.hbm [shape: bf16[512,256], index: 1, kind: input, shape index: {}]   ;;  %s1683_s2 = inlined_call_operand.hbm [shape: bf16[256,128], index: 2, kind: input, shape index: {}]   ;;  %s1684_s3 = inlined_call_operand.vmem [shape: bf16[128,64], index: 3, kind: input, shape index: {}]   ;;  %s1685_s4 = inlined_call_operand.vmem [shape: f32[1,640], index: 4, kind: input, shape index: {}]   ;;  %s1686_s5 = inlined_call_operand.vmem [shape: f32[2,1], index: 5, kind: output, shape index: {}]  }
   0x1   :  { %s18_s20 = sshll.u32 %s1682_s1, 4  ;;  %s19_s20 = int_to_ptr.hbm [resolvable:$true] %s18_s20 }
   0x2   :  { %11 = vsyncpa [#allocation5], 0  ;;  %s1432_s21 = smov [#allocation2]   ;;  %s31_s25 = sshll.u32 %s1683_s2, 4  ;;  %s32_s25 = int_to_ptr.hbm [resolvable:$true] %s31_s25 }
   0x3   :  { %s20_s22 = sshll.u32 %s1432_s21, 4  ;;  %s1433_s26 = smov 128   ;;  %s21_s22 = int_to_ptr.vmem [resolvable:$true] %s20_s22 }
   0x4   :  { %s1434_s27 = smov 8   ;;  %s1435_s28 = smov [#allocation4]  }
   0x5   :  { %26 = dma.hbm_to_vmem [thread:$0]  %s19_s20, 8192, %s21_s22, [#allocation3], %s1433_s26, %s1433_s26, %s1434_s27  }
   0x6   :  { %s33_s29 = sshll.u32 %s1435_s28, 4  ;;  %s1436_s30 = smov 64   ;;  %s34_s29 = int_to_ptr.vmem [resolvable:$true] %s33_s29 }
   0x7   :  { %s1437_s6 = smov 4  }
   0x8   :  { %39 = dma.hbm_to_vmem [thread:$0]  %s32_s25, 2048, %s34_s29, [#allocation5], %s1436_s30, %s1436_s30, %s1437_s6  }
   0x9   :  { %1428 = dma.done.wait [#allocation3], 8192  }
   0xa   :  { %1429 = vsyncadd [#allocation3], 4294959104 }
   0xb   :  { %1430 = dma.done.wait [#allocation5], 2048  }
   0xc   :  { %1431 = vsyncadd [#allocation5], 4294965248  ;;  %v989_v0 = vld [vmem:[#allocation2 + $0x70] sm:$0xf]  ;;  %v1298_v1 = vld [vmem:[#allocation2 + $0x74] sm:$0xf0] }
   0xd   :  { %v1053_v2 = vld [vmem:[#allocation2 + $0xf0] sm:$0xf]  ;;  %v990_v3 = vor.u32 %v1298_v1, %v989_v0  ;;  %v1314_v4 = vld [vmem:[#allocation2 + $0xf4] sm:$0xf0]  ;;  %v981_v11 = vld [vmem:[#allocation2 + $0x60] sm:$0xf] }
   0xe   :  { %v1117_v5 = vld [vmem:[#allocation2 + $0x170] sm:$0xf]  ;;  %v1330_v6 = vld [vmem:[#allocation2 + $0x174] sm:$0xf0]  ;;  %v1054_v7 = vor.u32 %v1314_v4, %v1053_v2  ;;  %v1296_v13 = vld [vmem:[#allocation2 + $0x64] sm:$0xf0] }
   0xf   :  { %v1118_v8 = vor.u32 %v1330_v6, %v1117_v5  ;;  %v1181_v9 = vld [vmem:[#allocation2 + $0x1f0] sm:$0xf]  ;;  %v1346_v10 = vld [vmem:[#allocation2 + $0x1f4] sm:$0xf0]  ;;  %562 = vmatpush.bf16.msra.mxu0 %v990_v3  ;;  %v1045_v14 = vld [vmem:[#allocation2 + $0xe0] sm:$0xf]  ;;  %v982_v16 = vor.u32 %v1296_v13, %v981_v11 }
  0x10   :  { %v1182_v12 = vor.u32 %v1346_v10, %v1181_v9  ;;  %v1312_v15 = vld [vmem:[#allocation2 + $0xe4] sm:$0xf0]  ;;  %575 = vmatpush.bf16.msra.mxu1 %v1054_v7  ;;  %v1109_v18 = vld [vmem:[#allocation2 + $0x160] sm:$0xf]  ;;  %v973_v23 = vld [vmem:[#allocation2 + $0x50] sm:$0xf] }
  0x11   :  { %588 = vmatpush.bf16.msra.mxu2 %v1118_v8  ;;  %v1046_v17 = vor.u32 %v1312_v15, %v1045_v14  ;;  %v1328_v19 = vld [vmem:[#allocation2 + $0x164] sm:$0xf0]  ;;  %v1173_v20 = vld [vmem:[#allocation2 + $0x1e0] sm:$0xf]  ;;  %v1294_v24 = vld [vmem:[#allocation2 + $0x54] sm:$0xf0] }
  0x12   :  { %601 = vmatpush.bf16.msra.mxu3 %v1182_v12  ;;  %v1110_v21 = vor.u32 %v1328_v19, %v1109_v18  ;;  %v1344_v22 = vld [vmem:[#allocation2 + $0x1e4] sm:$0xf0]  ;;  %v1037_v26 = vld [vmem:[#allocation2 + $0xd0] sm:$0xf]  ;;  %v1310_v27 = vld [vmem:[#allocation2 + $0xd4] sm:$0xf0]  ;;  %v974_v29 = vor.u32 %v1294_v24, %v973_v23 }
  0x13   :  { %v1174_v25 = vor.u32 %v1344_v22, %v1173_v20  ;;  %v1101_v28 = vld [vmem:[#allocation2 + $0x150] sm:$0xf]  ;;  %563 = vmatpush.bf16.msra.mxu0 %v982_v16  ;;  %v1326_v30 = vld [vmem:[#allocation2 + $0x154] sm:$0xf0]  ;;  %v1038_v33 = vor.u32 %v1310_v27, %v1037_v26  ;;  %v965_v35 = vld [vmem:[#allocation2 + $0x40] sm:$0xf] }
  0x14   :  { %v1165_v31 = vld [vmem:[#allocation2 + $0x1d0] sm:$0xf]  ;;  %v1342_v32 = vld [vmem:[#allocation2 + $0x1d4] sm:$0xf0]  ;;  %576 = vmatpush.bf16.msra.mxu1 %v1046_v17  ;;  %v1102_v34 = vor.u32 %v1326_v30, %v1101_v28  ;;  %v1292_v36 = vld [vmem:[#allocation2 + $0x44] sm:$0xf0] }
  0x15   :  { %589 = vmatpush.bf16.msra.mxu2 %v1110_v21  ;;  %v1029_v37 = vld [vmem:[#allocation2 + $0xc0] sm:$0xf]  ;;  %v1166_v38 = vor.u32 %v1342_v32, %v1165_v31  ;;  %v1308_v39 = vld [vmem:[#allocation2 + $0xc4] sm:$0xf0]  ;;  %v966_v44 = vor.u32 %v1292_v36, %v965_v35  ;;  %v957_v47 = vld [vmem:[#allocation2 + $0x30] sm:$0xf] }
  0x16   :  { %602 = vmatpush.bf16.msra.mxu3 %v1174_v25  ;;  %v1093_v40 = vld [vmem:[#allocation2 + $0x140] sm:$0xf]  ;;  %v1324_v41 = vld [vmem:[#allocation2 + $0x144] sm:$0xf0]  ;;  %v1030_v45 = vor.u32 %v1308_v39, %v1029_v37  ;;  %v1290_v48 = vld [vmem:[#allocation2 + $0x34] sm:$0xf0] }
  0x17   :  { %v1157_v42 = vld [vmem:[#allocation2 + $0x1c0] sm:$0xf]  ;;  %v1340_v43 = vld [vmem:[#allocation2 + $0x1c4] sm:$0xf0]  ;;  %564 = vmatpush.bf16.msra.mxu0 %v974_v29  ;;  %v1094_v46 = vor.u32 %v1324_v41, %v1093_v40  ;;  %v1021_v49 = vld [vmem:[#allocation2 + $0xb0] sm:$0xf]  ;;  %v958_v56 = vor.u32 %v1290_v48, %v957_v47 }
  0x18   :  { %577 = vmatpush.bf16.msra.mxu1 %v1038_v33  ;;  %v1158_v50 = vor.u32 %v1340_v43, %v1157_v42  ;;  %v1306_v51 = vld [vmem:[#allocation2 + $0xb4] sm:$0xf0]  ;;  %v1085_v52 = vld [vmem:[#allocation2 + $0x130] sm:$0xf]  ;;  %v949_v57 = vld [vmem:[#allocation2 + $0x20] sm:$0xf] }
  0x19   :  { %590 = vmatpush.bf16.msra.mxu2 %v1102_v34  ;;  %v1322_v53 = vld [vmem:[#allocation2 + $0x134] sm:$0xf0]  ;;  %v1149_v54 = vld [vmem:[#allocation2 + $0x1b0] sm:$0xf]  ;;  %v1288_v58 = vld [vmem:[#allocation2 + $0x24] sm:$0xf0]  ;;  %v1022_v59 = vor.u32 %v1306_v51, %v1021_v49 }
  0x1a   :  { %603 = vmatpush.bf16.msra.mxu3 %v1166_v38  ;;  %v1338_v55 = vld [vmem:[#allocation2 + $0x1b4] sm:$0xf0]  ;;  %v1086_v60 = vor.u32 %v1322_v53, %v1085_v52  ;;  %v1013_v61 = vld [vmem:[#allocation2 + $0xa0] sm:$0xf]  ;;  %v1304_v62 = vld [vmem:[#allocation2 + $0xa4] sm:$0xf0]  ;;  %v950_v8 = vor.u32 %v1288_v58, %v949_v57 }
  0x1b   :  { %565 = vmatpush.bf16.msra.mxu0 %v966_v44  ;;  %v1077_v63 = vld [vmem:[#allocation2 + $0x120] sm:$0xf]  ;;  %v1150_v0 = vor.u32 %v1338_v55, %v1149_v54  ;;  %v1320_v1 = vld [vmem:[#allocation2 + $0x124] sm:$0xf0]  ;;  %v941_v4 = vld [vmem:[#allocation2 + $0x10] sm:$0xf]  ;;  %v1014_v15 = vor.u32 %v1304_v62, %v1013_v61 }
  0x1c   :  { %578 = vmatpush.bf16.msra.mxu1 %v1030_v45  ;;  %v1141_v2 = vld [vmem:[#allocation2 + $0x1a0] sm:$0xf]  ;;  %v1336_v3 = vld [vmem:[#allocation2 + $0x1a4] sm:$0xf0]  ;;  %v1286_v5 = vld [vmem:[#allocation2 + $0x14] sm:$0xf0]  ;;  %v1078_v16 = vor.u32 %v1320_v1, %v1077_v63 }
  0x1d   :  { %591 = vmatpush.bf16.msra.mxu2 %v1094_v46  ;;  %v1476_v6 = vld [vmem:[#allocation2 + $0x90] sm:$0xf]  ;;  %v1478_v7 = vld [vmem:[#allocation2 + $0x94] sm:$0xf0]  ;;  %v1484_v13 = vld [vmem:[#allocation2] sm:$0xf]  ;;  %v1142_v22 = vor.u32 %v1336_v3, %v1141_v2  ;;  %v942_v29 = vor.u32 %v1286_v5, %v941_v4 }
  0x1e   :  { %604 = vmatpush.bf16.msra.mxu3 %v1158_v50  ;;  %v1069_v9 = vld [vmem:[#allocation2 + $0x110] sm:$0xf]  ;;  %v1318_v10 = vld [vmem:[#allocation2 + $0x114] sm:$0xf0]  ;;  %v1486_v14 = vld [vmem:[#allocation2 + $0x4] sm:$0xf0]  ;;  %v1006_v30 = vor.u32 %v1478_v7, %v1476_v6 }
  0x1f   :  { %566 = vmatpush.bf16.msra.mxu0 %v958_v56  ;;  %v1480_v11 = vld [vmem:[#allocation2 + $0x190] sm:$0xf]  ;;  %v1482_v12 = vld [vmem:[#allocation2 + $0x194] sm:$0xf0]  ;;  %v1488_v17 = vld [vmem:[#allocation2 + $0x80] sm:$0xf]  ;;  %v1070_v34 = vor.u32 %v1318_v10, %v1069_v9  ;;  %v934_v36 = vor.u32 %v1486_v14, %v1484_v13 }
  0x20   :  { %579 = vmatpush.bf16.msra.mxu1 %v1022_v59  ;;  %v1490_v18 = vld [vmem:[#allocation2 + $0x84] sm:$0xf0]  ;;  %v1492_v19 = vld [vmem:[#allocation2 + $0x100] sm:$0xf]  ;;  %v1500_v24 = vld [vmem:[#allocation2 + $0x74] sm:$0xf]  ;;  %v1134_v35 = vor.u32 %v1482_v12, %v1480_v11 }
  0x21   :  { %592 = vmatpush.bf16.msra.mxu2 %v1086_v60  ;;  %v1494_v20 = vld [vmem:[#allocation2 + $0x104] sm:$0xf0]  ;;  %v1496_v21 = vld [vmem:[#allocation2 + $0x180] sm:$0xf]  ;;  %v1502_v25 = vld [vmem:[#allocation2 + $0x78] sm:$0xf0]  ;;  %v998_v40 = vor.u32 %v1490_v18, %v1488_v17 }
  0x22   :  { %605 = vmatpush.bf16.msra.mxu3 %v1150_v0  ;;  %v1498_v23 = vld [vmem:[#allocation2 + $0x184] sm:$0xf0]  ;;  %v1504_v26 = vld [vmem:[#allocation2 + $0xf4] sm:$0xf]  ;;  %v1506_v27 = vld [vmem:[#allocation2 + $0xf8] sm:$0xf0]  ;;  %v1062_v41 = vor.u32 %v1494_v20, %v1492_v19  ;;  %v994_v43 = vor.u32 %v1500_v24, %v1502_v25 }
  0x23   :  { %v1508_v28 = vld [vmem:[#allocation2 + $0x174] sm:$0xf]  ;;  %567 = vmatpush.bf16.msra.mxu0 %v950_v8  ;;  %v1512_v31 = vld [vmem:[#allocation2 + $0x178] sm:$0xf0]  ;;  %v1522_v37 = vld [vmem:[#allocation2 + $0x64] sm:$0xf]  ;;  %v1126_v42 = vor.u32 %v1498_v23, %v1496_v21  ;;  %v1058_v47 = vor.u32 %v1504_v26, %v1506_v27 }
  0x24   :  { %v1514_v32 = vld [vmem:[#allocation2 + $0x1f4] sm:$0xf]  ;;  %v1516_v33 = vld [vmem:[#allocation2 + $0x1f8] sm:$0xf0]  ;;  %580 = vmatpush.bf16.msra.mxu1 %v1014_v15  ;;  %v1524_v38 = vld [vmem:[#allocation2 + $0x68] sm:$0xf0]  ;;  %v1122_v48 = vor.u32 %v1508_v28, %v1512_v31 }
  0x25   :  { %593 = vmatpush.bf16.msra.mxu2 %v1078_v16  ;;  %v1526_v39 = vld [vmem:[#allocation2 + $0xe4] sm:$0xf]  ;;  %v1536_v44 = vld [vmem:[#allocation2 + $0xe8] sm:$0xf0]  ;;  %v1186_v49 = vor.u32 %v1514_v32, %v1516_v33  ;;  %v986_v50 = vor.u32 %v1522_v37, %v1524_v38  ;;  %v55_v56 = vld [vmem:[%s1681_s0 + $0x18] sm:$0xff]  ;;  %vm229_vm0 = vcmask 1041409  }
  0x26   :  { %606 = vmatpush.bf16.msra.mxu3 %v1142_v22  ;;  %v1538_v45 = vld [vmem:[#allocation2 + $0x164] sm:$0xf]  ;;  %v1540_v46 = vld [vmem:[#allocation2 + $0x168] sm:$0xf0]  ;;  %v1050_v54 = vor.u32 %v1526_v39, %v1536_v44  ;;  %v59_v58 = vld [vmem:[%s1681_s0 + $0x38] sm:$0xff]  ;;  %v66_v61 = vunpack.c.l.bf16 %v55_v56  ;;  %v67_v3 = vunpack.c.h.bf16 %v55_v56  ;;  %vm914_vm1 = vcmask 517120  }
  0x27   :  { %v1550_v51 = vld [vmem:[#allocation2 + $0x1e4] sm:$0xf]  ;;  %v1552_v52 = vld [vmem:[#allocation2 + $0x1e8] sm:$0xf0]  ;;  %568 = vmatpush.bf16.msra.mxu0 %v942_v29  ;;  %v1114_v55 = vor.u32 %v1538_v45, %v1540_v46  ;;  %v74_v63 = vunpack.c.l.bf16 %v59_v58  ;;  %v1570_v0 = vld [vmem:[#allocation2 + $0x54] sm:$0xf]  ;;  %v75_v10 = vunpack.c.h.bf16 %v59_v58 }
  0x28   :  { %v53_v53 = vld [vmem:[%s1681_s0 + $0x8] sm:$0xff]  ;;  %581 = vmatpush.bf16.msra.mxu1 %v1006_v30  ;;  %v1572_v1 = vld [vmem:[#allocation2 + $0x58] sm:$0xf0]  ;;  %v1574_v2 = vld [vmem:[#allocation2 + $0xd4] sm:$0xf]  ;;  %v1178_v4 = vor.u32 %v1550_v51, %v1552_v52  ;;  %vm923_vm2 = vcmask 1024  }
  0x29   :  { %v57_v57 = vld [vmem:[%s1681_s0 + $0x28] sm:$0xff]  ;;  %v62_v59 = vunpack.c.l.bf16 %v53_v53  ;;  %v63_v60 = vunpack.c.h.bf16 %v53_v53  ;;  %594 = vmatpush.bf16.msra.mxu2 %v1070_v34  ;;  %v978_v5 = vor.u32 %v1570_v0, %v1572_v1  ;;  %v1580_v6 = vld [vmem:[#allocation2 + $0xd8] sm:$0xf0]  ;;  %v1582_v7 = vld [vmem:[#allocation2 + $0x154] sm:$0xf] }
  0x2a   :  { %v70_v62 = vunpack.c.l.bf16 %v57_v57  ;;  %607 = vmatpush.bf16.msra.mxu3 %v1134_v35  ;;  %v1584_v8 = vld [vmem:[#allocation2 + $0x158] sm:$0xf0]  ;;  %v71_v9 = vunpack.c.h.bf16 %v57_v57  ;;  %v1042_v13 = vor.u32 %v1574_v2, %v1580_v6  ;;  %v1590_v15 = vld [vmem:[#allocation2 + $0x1d4] sm:$0xf]  ;;  %v52_v17 = vld [vmem:[%s1681_s0] sm:$0xff] }
  0x2b   :  { %v90_v11 = vadd.f32 %v66_v61, %v62_v59  ;;  %v1106_v14 = vor.u32 %v1582_v7, %v1584_v8  ;;  %v1592_v16 = vld [vmem:[#allocation2 + $0x1d8] sm:$0xf0]  ;;  %569 = vmatpush.bf16.msra.mxu0 %v934_v36  ;;  %v54_v19 = vld [vmem:[%s1681_s0 + $0x10] sm:$0xff]  ;;  %v56_v20 = vld [vmem:[%s1681_s0 + $0x20] sm:$0xff]  ;;  %v60_v22 = vunpack.c.l.bf16 %v52_v17  ;;  %v97_v23 = vadd.f32 %v67_v3, %v63_v60 }
  0x2c   :  { %v118_v12 = vadd.f32 %v74_v63, %v70_v62  ;;  %v1170_v18 = vor.u32 %v1590_v15, %v1592_v16  ;;  %v58_v21 = vld [vmem:[%s1681_s0 + $0x30] sm:$0xff]  ;;  %v125_v24 = vadd.f32 %v75_v10, %v71_v9  ;;  %582 = vmatpush.bf16.msra.mxu1 %v998_v40  ;;  %v64_v27 = vunpack.c.l.bf16 %v54_v19  ;;  %v1291_v2 = vld [vmem:[#allocation2 + $0x44] sm:$0xf]  ;;  %v967_v6 = vld [vmem:[#allocation2 + $0x48] sm:$0xf0] }
  0x2d   :  { %595 = vmatpush.bf16.msra.mxu2 %v1062_v41  ;;  %v91_v25 = vrot.slane %v90_v11, 4  ;;  %v68_v28 = vunpack.c.l.bf16 %v56_v20  ;;  %v72_v29 = vunpack.c.l.bf16 %v58_v21  ;;  %v98_v30 = vrot.slane %v97_v23, 4 }
  0x2e   :  { %v119_v26 = vrot.slane %v118_v12, 4  ;;  %608 = vmatpush.bf16.msra.mxu3 %v1126_v42  ;;  %v126_v31 = vrot.slane %v125_v24, 4  ;;  %v61_v32 = vunpack.c.h.bf16 %v52_v17  ;;  %v76_v35 = vadd.f32 %v64_v27, %v60_v22  ;;  %v1031_v22 = vld [vmem:[#allocation2 + $0xc8] sm:$0xf0] }
  0x2f   :  { %614 = vmatpush.bf16.msrb.mxu0 %v994_v43  ;;  %v92_v33 = vadd.f32 %v91_v25, %v90_v11  ;;  %v65_v36 = vunpack.c.h.bf16 %v54_v19  ;;  %v104_v51 = vadd.f32 %v72_v29, %v68_v28  ;;  %v99_v40 = vadd.f32 %v98_v30, %v97_v23  ;;  %v1095_v25 = vld [vmem:[#allocation2 + $0x148] sm:$0xf0]  ;;  %v1339_v30 = vld [vmem:[#allocation2 + $0x1c4] sm:$0xf] }
  0x30   :  { %627 = vmatpush.bf16.msrb.mxu1 %v1058_v47  ;;  %v120_v34 = vadd.f32 %v119_v26, %v118_v12  ;;  %v127_v41 = vadd.f32 %v126_v31, %v125_v24  ;;  %v69_v52 = vunpack.c.h.bf16 %v56_v20  ;;  %v77_v57 = vrot.slane %v76_v35, 4  ;;  %v1159_v31 = vld [vmem:[#allocation2 + $0x1c8] sm:$0xf0] }
  0x31   :  { %640 = vmatpush.bf16.msrb.mxu2 %v1122_v48  ;;  %v93_v53 = vrot.slane %v92_v33, 2  ;;  %v73_v42 = vunpack.c.h.bf16 %v58_v21  ;;  %v105_v43 = vrot.slane %v104_v51, 4  ;;  %v100_v47 = vrot.slane %v99_v40, 2 }
  0x32   :  { %653 = vmatpush.bf16.msrb.mxu3 %v1186_v49  ;;  %v121_v56 = vrot.slane %v120_v34, 2  ;;  %v128_v48 = vrot.slane %v127_v41, 2  ;;  %v83_v58 = vadd.f32 %v65_v36, %v61_v32  ;;  %v78_v60 = vadd.f32 %v77_v57, %v76_v35  ;;  %v1289_v36 = vld [vmem:[#allocation2 + $0x34] sm:$0xf]  ;;  %v1023_v57 = vld [vmem:[#allocation2 + $0xb8] sm:$0xf0] }
  0x33   :  { %615 = vmatpush.bf16.msrb.mxu0 %v986_v50  ;;  %v94_v49 = vadd.f32 %v93_v53, %v92_v33  ;;  %v106_v61 = vadd.f32 %v105_v43, %v104_v51  ;;  %v101_v37 = vadd.f32 %v100_v47, %v99_v40  ;;  %v111_v9 = vadd.f32 %v73_v42, %v69_v52  ;;  %v959_v51 = vld [vmem:[#allocation2 + $0x38] sm:$0xf0]  ;;  %v1305_v40 = vld [vmem:[#allocation2 + $0xb4] sm:$0xf] }
  0x34   :  { %628 = vmatpush.bf16.msrb.mxu1 %v1050_v54  ;;  %v122_v59 = vadd.f32 %v121_v56, %v120_v34  ;;  %v129_v38 = vadd.f32 %v128_v48, %v127_v41  ;;  %v84_v50 = vrot.slane %v83_v58, 4  ;;  %v79_v3 = vrot.slane %v78_v60, 2  ;;  %v1321_v42 = vld [vmem:[#allocation2 + $0x134] sm:$0xf]  ;;  %v1087_v43 = vld [vmem:[#allocation2 + $0x138] sm:$0xf0] }
  0x35   :  { %641 = vmatpush.bf16.msrb.mxu2 %v1114_v55  ;;  %v95_v62 = vrot.slane %v94_v49, 1  ;;  %v107_v39 = vrot.slane %v106_v61, 2  ;;  %v102_v44 = vrot.slane %v101_v37, 1  ;;  %v112_v10 = vrot.slane %v111_v9, 4 }
  0x36   :  { %654 = vmatpush.bf16.msrb.mxu3 %v1178_v4  ;;  %v123_v63 = vrot.slane %v122_v59, 1  ;;  %v130_v45 = vrot.slane %v129_v38, 1  ;;  %v85_v46 = vadd.f32 %v84_v50, %v83_v58  ;;  %v80_v4 = vadd.f32 %v79_v3, %v78_v60  ;;  %v1151_v60 = vld [vmem:[#allocation2 + $0x1b8] sm:$0xf0] }
  0x37   :  { %616 = vmatpush.bf16.msrb.mxu0 %v978_v5  ;;  %v96_v54 = vadd.f32 %v95_v62, %v94_v49  ;;  %v108_v0 = vadd.f32 %v107_v39, %v106_v61  ;;  %v103_v1 = vadd.f32 %v102_v44, %v101_v37  ;;  %v113_v20 = vadd.f32 %v112_v10, %v111_v9  ;;  %v1287_v62 = vld [vmem:[#allocation2 + $0x24] sm:$0xf] }
  0x38   :  { %v124_v55 = vadd.f32 %v123_v63, %v122_v59  ;;  %629 = vmatpush.bf16.msrb.mxu1 %v1042_v13  ;;  %v131_v5 = vadd.f32 %v130_v45, %v129_v38  ;;  %v86_v11 = vrot.slane %v85_v46, 2  ;;  %v81_v19 = vrot.slane %v80_v4, 1  ;;  %v1337_v59 = vld [vmem:[#allocation2 + $0x1b4] sm:$0xf]  ;;  %v951_v63 = vld [vmem:[#allocation2 + $0x28] sm:$0xf0] }
  0x39   :  { %642 = vmatpush.bf16.msrb.mxu2 %v1106_v14  ;;  %v138_v12 = vpack.c.bf16 %v96_v54, %v96_v54  ;;  %v109_v13 = vrot.slane %v108_v0, 1  ;;  %v139_v21 = vpack.c.bf16 %v103_v1, %v103_v1  ;;  %v1307_v14 = vld [vmem:[#allocation2 + $0xc4] sm:$0xf]  ;;  %v114_v16 = vrot.slane %v113_v20, 2 }
  0x3a   :  { %655 = vmatpush.bf16.msrb.mxu3 %v1170_v18  ;;  %v142_v17 = vpack.c.bf16 %v124_v55, %v124_v55  ;;  %v143_v7 = vpack.c.bf16 %v131_v5, %v131_v5  ;;  %v87_v8 = vadd.f32 %v86_v11, %v85_v46  ;;  %v82_v15 = vadd.f32 %v81_v19, %v80_v4  ;;  %v1323_v18 = vld [vmem:[#allocation2 + $0x144] sm:$0xf]  ;;  %v1015_v55 = vld [vmem:[#allocation2 + $0xa8] sm:$0xf0]  ;;  %v1285_v19 = vld [vmem:[#allocation2 + $0x14] sm:$0xf] }
  0x3b   :  { %v223_v23 = vunpack.c.l.b16 %v138_v12  ;;  %v110_v26 = vadd.f32 %v109_v13, %v108_v0  ;;  %v224_v27 = vunpack.c.l.b16 %v139_v21  ;;  %v115_v34 = vadd.f32 %v114_v16, %v113_v20  ;;  %v1303_v54 = vld [vmem:[#allocation2 + $0xa4] sm:$0xf]  ;;  %v1079_v11 = vld [vmem:[#allocation2 + $0x128] sm:$0xf0]  ;;  %v943_v20 = vld [vmem:[#allocation2 + $0x18] sm:$0xf0] }
  0x3c   :  { %v227_v24 = vunpack.c.l.b16 %v142_v17  ;;  %v228_v28 = vunpack.c.l.b16 %v143_v7  ;;  %v88_v29 = vrot.slane %v87_v8, 1  ;;  %v136_v33 = vpack.c.bf16 %v82_v15, %v82_v15  ;;  %v1319_v5 = vld [vmem:[#allocation2 + $0x124] sm:$0xf]  ;;  %v1143_v17 = vld [vmem:[#allocation2 + $0x1a8] sm:$0xf0] }
  0x3d   :  { %v970_v35 = vor.u32 %v1291_v2, %v967_v6  ;;  %v140_v52 = vpack.c.bf16 %v110_v26, %v110_v26  ;;  %v116_v58 = vrot.slane %v115_v34, 1  ;;  %v1034_v49 = vor.u32 %v1307_v14, %v1031_v22  ;;  %v1335_v12 = vld [vmem:[#allocation2 + $0x1a4] sm:$0xf]  ;;  %v1301_v21 = vld [vmem:[#allocation2 + $0x94] sm:$0xf] }
  0x3e   :  { %v232_v32 = vsel %vm229_vm0, %v227_v24, %v223_v23  ;;  %v233_v53 = vsel %vm229_vm0, %v228_v28, %v224_v27  ;;  %v89_v56 = vadd.f32 %v88_v29, %v87_v8  ;;  %v221_v47 = vunpack.c.l.b16 %v136_v33  ;;  %v1007_v7 = vld [vmem:[#allocation2 + $0x98] sm:$0xf0]  ;;  %v1317_v23 = vld [vmem:[#allocation2 + $0x114] sm:$0xf]  ;;  %v935_v26 = vld [vmem:[#allocation2 + $0x8] sm:$0xf0] }
  0x3f   :  { %v1630_v41 = vpack.c.b16 %v232_v32, %v232_v32  ;;  %v1633_v48 = vpack.c.b16 %v233_v53, %v233_v53  ;;  %617 = vmatpush.bf16.msrb.mxu0 %v970_v35  ;;  %v225_v61 = vunpack.c.l.b16 %v140_v52  ;;  %v1098_v38 = vor.u32 %v1323_v18, %v1095_v25  ;;  %630 = vmatpush.bf16.msrb.mxu1 %v1034_v49  ;;  %v1071_v24 = vld [vmem:[#allocation2 + $0x118] sm:$0xf0]  ;;  %v1333_v15 = vld [vmem:[#allocation2 + $0x194] sm:$0xf]  ;;  %v1283_v25 = vld [vmem:[#allocation2 + $0x4] sm:$0xf] }
  0x40   :  { %v137_v37 = vpack.c.bf16 %v89_v56, %v89_v56  ;;  %v1162_v50 = vor.u32 %v1339_v30, %v1159_v31  ;;  %v117_v3 = vadd.f32 %v116_v58, %v115_v34  ;;  %v962_v9 = vor.u32 %v1289_v36, %v959_v51  ;;  %v1135_v18 = vld [vmem:[#allocation2 + $0x198] sm:$0xf0]  ;;  %v1299_v29 = vld [vmem:[#allocation2 + $0x84] sm:$0xf]  ;;  %v999_v30 = vld [vmem:[#allocation2 + $0x88] sm:$0xf0] }
  0x41   :  { %596 = vmatmul.bf16.vlgmr.msra.gmra.mxu2 %v1630_v41  ;;  %609 = vmatmul.bf16.vlgmr.msra.gmra.mxu3 %v1633_v48  ;;  %v1026_v39 = vor.u32 %v1305_v40, %v1023_v57  ;;  %v230_v44 = vsel %vm229_vm0, %v225_v61, %v221_v47  ;;  %v1090_v45 = vor.u32 %v1321_v42, %v1087_v43  ;;  %v1315_v33 = vld [vmem:[#allocation2 + $0x104] sm:$0xf]  ;;  %v1063_v34 = vld [vmem:[#allocation2 + $0x108] sm:$0xf0]  ;;  %v1354_v51 = vld [vmem:[#allocation4 + $0x38] sm:$0xff] }
  0x42   :  { %643 = vmatpush.bf16.msrb.mxu2 %v1098_v38  ;;  %656 = vmatpush.bf16.msrb.mxu3 %v1162_v50  ;;  %v1154_v46 = vor.u32 %v1337_v59, %v1151_v60  ;;  %v234_v4 = vpack.c.b16 %v230_v44, %v230_v44  ;;  %v141_v10 = vpack.c.bf16 %v117_v3, %v117_v3  ;;  %v222_v0 = vunpack.c.l.b16 %v137_v37  ;;  %v1331_v35 = vld [vmem:[#allocation2 + $0x184] sm:$0xf]  ;;  %v1127_v36 = vld [vmem:[#allocation2 + $0x188] sm:$0xf0]  ;;  %v1353_v56 = vld [vmem:[#allocation4 + $0x30] sm:$0xff] }
  0x43   :  { %618 = vmatpush.bf16.msrb.mxu0 %v962_v9  ;;  %v954_v1 = vor.u32 %v1287_v62, %v951_v63  ;;  %631 = vmatpush.bf16.msrb.mxu1 %v1026_v39  ;;  %v1018_v6 = vor.u32 %v1303_v54, %v1015_v55  ;;  %v1082_v13 = vor.u32 %v1319_v5, %v1079_v11  ;;  %v1352_v57 = vld [vmem:[#allocation4 + $0x28] sm:$0xff]  ;;  %v1351_v42 = vld [vmem:[#allocation4 + $0x20] sm:$0xff]  ;;  %v1350_v43 = vld [vmem:[#allocation4 + $0x18] sm:$0xff] }
  0x44   :  { %570 = vmatmul.bf16.vlgmr.msra.gmra.mxu0 %v234_v4  ;;  %v226_v2 = vunpack.c.l.b16 %v141_v10  ;;  %v1146_v14 = vor.u32 %v1335_v12, %v1143_v17  ;;  %v946_v22 = vor.u32 %v1285_v19, %v943_v20  ;;  %v1010_v27 = vor.u32 %v1301_v21, %v1007_v7  ;;  %v1349_v47 = vld [vmem:[#allocation4 + $0x10] sm:$0xff]  ;;  %v1348_v58 = vld [vmem:[#allocation4 + $0x8] sm:$0xff]  ;;  %v1362_v49 = vld [vmem:[#allocation4 + $0x78] sm:$0xff] }
  0x45   :  { %v1074_v28 = vor.u32 %v1317_v23, %v1071_v24  ;;  %v1138_v31 = vor.u32 %v1333_v15, %v1135_v18  ;;  %v938_v32 = vor.u32 %v1283_v25, %v935_v26  ;;  %v1002_v40 = vor.u32 %v1299_v29, %v999_v30  ;;  %v1347_v59 = vld [vmem:[#allocation4] sm:$0xff]  ;;  %v1361_v60 = vld [vmem:[#allocation4 + $0x70] sm:$0xff]  ;;  %v1360_v61 = vld [vmem:[#allocation4 + $0x68] sm:$0xff] }
  0x46   :  { %644 = vmatpush.bf16.msrb.mxu2 %v1090_v45  ;;  %657 = vmatpush.bf16.msrb.mxu3 %v1154_v46  ;;  %v231_v8 = vsel %vm229_vm0, %v226_v2, %v222_v0  ;;  %v1066_v52 = vor.u32 %v1315_v33, %v1063_v34  ;;  %v1130_v53 = vor.u32 %v1331_v35, %v1127_v36  ;;  %v1357_v37 = vld [vmem:[#allocation4 + $0x50] sm:$0xff]  ;;  %v132_v38 = vld [vmem:[%s1685_s4] sm:$0x3]  ;;  %v1356_v62 = vld [vmem:[#allocation4 + $0x48] sm:$0xff] }
  0x47   :  { %619 = vmatpush.bf16.msrb.mxu0 %v954_v1  ;;  %v235_v16 = vpack.c.b16 %v231_v8, %v231_v8  ;;  %632 = vmatpush.bf16.msrb.mxu1 %v1018_v6  ;;  %v209_v50 = vperm.slane %v132_v38, 0  ;;  %v1355_v9 = vld [vmem:[#allocation4 + $0x40] sm:$0xff]  ;;  %v210_v12 = vperm.slane %v132_v38, 1  ;;  %v1369_v18 = vld [vmem:[%s1684_s3 + $0x30] sm:$0xff]  ;;  %v1368_v25 = vld [vmem:[%s1684_s3 + $0x28] sm:$0xff] }
  0x48   :  { %v1367_v26 = vld [vmem:[%s1684_s3 + $0x20] sm:$0xff]  ;;  %v1364_v29 = vld [vmem:[%s1684_s3 + $0x8] sm:$0xff] }
  0x49   :  { %583 = vmatmul.bf16.vlgmr.msra.gmra.mxu1 %v235_v16  ;;  %v1363_v30 = vld [vmem:[%s1684_s3] sm:$0xff] }
  0x4a   :  { %645 = vmatpush.bf16.msrb.mxu2 %v1082_v13  ;;  %658 = vmatpush.bf16.msrb.mxu3 %v1146_v14  ;;  %v1377_v33 = vld [vmem:[%s1685_s4 + $0x2] ss:$0 sm:$0xff] }
  0x4b   :  { %620 = vmatpush.bf16.msrb.mxu0 %v946_v22  ;;  %633 = vmatpush.bf16.msrb.mxu1 %v1010_v27  ;;  %v1366_v27 = vld [vmem:[%s1684_s3 + $0x18] sm:$0xff] }
  0x4e   :  { %646 = vmatpush.bf16.msrb.mxu2 %v1074_v28  ;;  %659 = vmatpush.bf16.msrb.mxu3 %v1138_v31  ;;  %v1365_v28 = vld [vmem:[%s1684_s3 + $0x10] sm:$0xff] }
  0x4f   :  { %621 = vmatpush.bf16.msrb.mxu0 %v938_v32  ;;  %634 = vmatpush.bf16.msrb.mxu1 %v1002_v40 }
  0x52   :  { %647 = vmatpush.bf16.msrb.mxu2 %v1066_v52  ;;  %660 = vmatpush.bf16.msrb.mxu3 %v1130_v53  ;;  %v1378_v53 = vld [vmem:[%s1685_s4 + $0x3] ss:$0 sm:$0xff] }
  0x53   :  { %801 = vmatpush.bf16.msra.mxu0 %v1354_v51  ;;  %814 = vmatpush.bf16.msra.mxu1 %v1362_v49 }
  0x54   :  { %622 = vmatmul.bf16.vlgmr.msrb.gmra.mxu0 %v234_v4 }
  0x55   :  { %648 = vmatmul.bf16.vlgmr.msrb.gmra.mxu2 %v1630_v41  ;;  %661 = vmatmul.bf16.vlgmr.msrb.gmra.mxu3 %v1633_v48  ;;  %v1359_v41 = vld [vmem:[#allocation4 + $0x60] sm:$0xff]  ;;  %v1358_v48 = vld [vmem:[#allocation4 + $0x58] sm:$0xff] }
  0x57   :  { %802 = vmatpush.bf16.msra.mxu0 %v1353_v56  ;;  %815 = vmatpush.bf16.msra.mxu1 %v1361_v60 }
  0x59   :  { %635 = vmatmul.bf16.vlgmr.msrb.gmra.mxu1 %v235_v16  ;;  %v1370_v16 = vld [vmem:[%s1684_s3 + $0x38] sm:$0xff] }
  0x5a   :  { %896 = vmatpush.bf16.msra.mxu2 %v1370_v16 }
  0x5b   :  { %803 = vmatpush.bf16.msra.mxu0 %v1352_v57  ;;  %816 = vmatpush.bf16.msra.mxu1 %v1360_v61 }
  0x5e   :  { %897 = vmatpush.bf16.msra.mxu2 %v1369_v18 }
  0x5f   :  { %804 = vmatpush.bf16.msra.mxu0 %v1351_v42  ;;  %817 = vmatpush.bf16.msra.mxu1 %v1359_v41  ;;  %v1379_v42 = vld [vmem:[%s1685_s4 + $0x4] ss:$0 sm:$0xff] }
  0x62   :  { %898 = vmatpush.bf16.msra.mxu2 %v1368_v25 }
  0x63   :  { %805 = vmatpush.bf16.msra.mxu0 %v1350_v43  ;;  %818 = vmatpush.bf16.msra.mxu1 %v1358_v48 }
  0x66   :  { %899 = vmatpush.bf16.msra.mxu2 %v1367_v26 }
  0x67   :  { %806 = vmatpush.bf16.msra.mxu0 %v1349_v47  ;;  %819 = vmatpush.bf16.msra.mxu1 %v1357_v37 }
  0x6a   :  { %900 = vmatpush.bf16.msra.mxu2 %v1366_v27 }
  0x6b   :  { %807 = vmatpush.bf16.msra.mxu0 %v1348_v58  ;;  %820 = vmatpush.bf16.msra.mxu1 %v1356_v62 }
  0x6e   :  { %901 = vmatpush.bf16.msra.mxu2 %v1365_v28 }
  0x6f   :  { %808 = vmatpush.bf16.msra.mxu0 %v1347_v59  ;;  %821 = vmatpush.bf16.msra.mxu1 %v1355_v9 }
  0x72   :  { %902 = vmatpush.bf16.msra.mxu2 %v1364_v29 }
  0x76   :  { %903 = vmatpush.bf16.msra.mxu2 %v1363_v30 }
  0xc1   :  { %v571_v63 = vpop.f32.mrf.mxu0 }
  0xc2   :  { %v572_v39 = vadd.f32 %v571_v63, %v209_v50 }
  0xc4   :  { %v597_v3 = vpop.f32.mrf.mxu2  ;;  %v610_v44 = vpop.f32.mrf.mxu3 }
  0xc6   :  { %v584_v45 = vpop.f32.mrf.mxu1 }
  0xc7   :  { %v585_v46 = vadd.f32 %v584_v45, %v572_v39 }
  0xc9   :  { %v598_v54 = vadd.f32 %v597_v3, %v585_v46  ;;  %v573_v55 = vpop.f32.mrf.mxu0 }
  0xcb   :  { %v611_v10 = vadd.f32 %v610_v44, %v598_v54 }
  0xcc   :  { %v599_v4 = vpop.f32.mrf.mxu2  ;;  %v612_v0 = vpop.f32.mrf.mxu3 }
  0xcd   :  { %v666_v1 = vmax.f32 %v611_v10, 0.0 }
  0xce   :  { %v586_v5 = vpop.f32.mrf.mxu1 }
  0xcf   :  { %v668_v11 = vpack.c.bf16 %v666_v1, %v666_v1 }
  0xd1   :  { %809 = vmatmul.bf16.vlgmr.msra.gmra.mxu0 %v668_v11  ;;  %v623_v17 = vpop.f32.mrf.mxu0 }
  0xd2   :  { %v624_v19 = vadd.f32 %v623_v17, %v210_v12 }
  0xd6   :  { %v636_v20 = vpop.f32.mrf.mxu1 }
  0xd7   :  { %v637_v2 = vadd.f32 %v636_v20, %v624_v19 }
  0xd8   :  { %v649_v6 = vpop.f32.mrf.mxu2  ;;  %v662_v13 = vpop.f32.mrf.mxu3 }
  0xd9   :  { %v650_v21 = vadd.f32 %v649_v6, %v637_v2  ;;  %v625_v7 = vpop.f32.mrf.mxu0 }
  0xdb   :  { %v663_v8 = vadd.f32 %v662_v13, %v650_v21 }
  0xdd   :  { %v667_v14 = vmax.f32 %v663_v8, 0.0 }
  0xde   :  { %v638_v22 = vpop.f32.mrf.mxu1 }
  0xdf   :  { %v669_v23 = vpack.c.bf16 %v667_v14, %v667_v14 }
  0xe0   :  { %v651_v24 = vpop.f32.mrf.mxu2  ;;  %v664_v15 = vpop.f32.mrf.mxu3 }
  0xe1   :  { %822 = vmatmul.bf16.vlgmr.msra.gmra.mxu1 %v669_v23 }
 0x14e   :  { %v810_v31 = vpop.f32.mrf.mxu0 }
 0x14f   :  { %v811_v34 = vadd.f32 %v1377_v33, %v810_v31 }
 0x156   :  { %v812_v32 = vpop.f32.mrf.mxu0 }
 0x15e   :  { %v823_v35 = vpop.f32.mrf.mxu1 }
 0x15f   :  { %v824_v36 = vadd.f32 %v823_v35, %v811_v34 }
 0x161   :  { %v827_v51 = vmax.f32 %v824_v36, 0.0 }
 0x163   :  { %v828_v40 = vpack.c.bf16 %v827_v51, %v827_v51 }
 0x165   :  { %904 = vmatmul.bf16.vlgmr.msra.gmra.mxu2 %v828_v40 }
 0x166   :  { %v825_v52 = vpop.f32.mrf.mxu1 }
 0x1e8   :  { %v905_v56 = vpop.f32.mrf.mxu2 }
 0x1e9   :  { %v906_v57 = vadd.f32 %v1378_v53, %v905_v56 }
 0x1eb   :  { %v909_v43 = vmax.f32 %v906_v57, 0.0 }
 0x1ed   :  { %v913_v47 = vmul.f32 %v1379_v42, %v909_v43 }
 0x1ef   :  { %v915_v58 = vsel %vm914_vm1, %v913_v47, 0.0 }
 0x1f0   :  { %v907_v49 = vpop.f32.mrf.mxu2  ;;  %916 = vadd.xlane.f32.xlu0 %v915_v58 }
 0x263   :  { %v917_v59 = vpop.xlane.xlu0 %916 }
 0x264   :  { %v918_v60 = vadd.f32 %v1379_v42, %v917_v59 }
 0x266   :  { %920 = vrot.lane.b32.xlu0 %v918_v60, %s1436_s30 }
 0x2d8   :  { %v921_v61 = vpop.permute.xlu0 %920 }
 0x2d9   :  { %924 = vst.msk [vmem:[%s1686_s5] sm:$0x3] %vm923_vm2, %v921_v61 }
 0x2da   :  { %929 = vsyncpa [#allocation3], 1 }
 0x2db   :  { %930 = vsyncpa [#allocation5], 1 }

</bundles_post_ra>
